<compile_context>
chip_gen: v7x
topology: tpu7x:2x2x1
jax: 0.10.0
libtpu: 0.0.40
codegen_flags: <defaults>
</compile_context>

<pallas_src>
import jax
import jax.numpy as jnp
from jax.experimental import pallas as pl
from jax.experimental.pallas import tpu as pltpu


def _focus_conv_mish_kernel(x_ref, w_ref, shift_ref, o_ref):
    # x_ref:     (Cin, tS)   bf16 space-to-depth'd input, spatial on lanes
    # w_ref:     (Cout, Cin) bf16 conv weight with BN scale folded in
    # shift_ref: (Cout, 1)   f32 folded conv-bias + BN shift
    # o_ref:     (Cout, tS)  f32 output tile (maps straight onto NCHW)
    z = jnp.dot(w_ref[...], x_ref[...], preferred_element_type=jnp.float32)
    z = z + shift_ref[...]                     # conv bias + BN (folded)
    # masks == 1.0 in the reference forward -> no-op.
    # Mish(z) = z * tanh(softplus(z)); with t = e^z,
    #   tanh(softplus(z)) = ((1+t)^2 - 1) / ((1+t)^2 + 1)
    # -> one EUP exp + one approx reciprocal.  Note: (1+t)^2 - 1 cancels for
    # z < ~-17 (mish snaps to 0 instead of ~z*e^z); absolute error ~1e-6,
    # benign at this tolerance.
    t = jnp.exp(z)
    u2 = (1.0 + t) * (1.0 + t)
    mish = z * (u2 - 1.0) * pl.reciprocal(u2 + 1.0, approx=True)
    # For z > 20, tanh(softplus(z)) == 1 in f32 and u2 may overflow to inf;
    # the select discards the inf/NaN lanes of the unused branch.
    out = jnp.where(z > 20.0, z, mish)
    o_ref[...] = out.astype(o_ref.dtype)


def focus_forward(x, w, b, gamma, beta, running_mean, running_var,
                  eps=1e-5, max_tile_s=16384):
    """Focus forward.

    x: (N, C, H, W) float32 (NCHW).  w: (Cout, 4*C) (PyTorch (Cout,Cin,1,1)
    squeezed).  b, gamma, beta, running_mean, running_var: (Cout,).
    Returns (N, Cout, H//2, W//2), same dtype as x.
    """
    N, C, H, W = x.shape
    Cout, Cin = w.shape
    assert Cin == 4 * C
    assert H % 2 == 0 and W % 2 == 0
    H2, W2 = H // 2, W // 2
    S = H2 * W2

    # Space-to-depth in torch.cat channel order ((2*s + r)*C + c), kept
    # channel-major with flat spatial so the kernel reads and writes NCHW
    # directly.  Emitted in bf16: the cast fuses into the XLA transpose, so
    # both the pre-pass write and the kernel read move half the bytes.
    xs2d = jnp.transpose(x.reshape(N, C, H2, 2, W2, 2),
                         (0, 5, 3, 1, 2, 4)).reshape(N, Cin, S)
    xs2d = xs2d.astype(jnp.bfloat16)

    # Fold conv bias + BatchNorm (inference) into weight/shift.
    scale = gamma / jnp.sqrt(running_var + eps)                 # (Cout,)
    w_f = (w * scale[:, None]).astype(jnp.bfloat16)             # (Cout, Cin)
    shift_f = (scale * (b - running_mean) + beta).reshape(Cout, 1)
    shift_f = shift_f.astype(jnp.float32)

    # Spatial tile: lane-dense (multiple of 128), as big as sensible; cdiv
    # grid + masked edge blocks handle tails.  Keep >=2 grid steps when N==1
    # so v7x megacore has something to shard.
    if S <= 128:
        tile_s = S
    else:
        tile_s = min(max_tile_s, S)
        tile_s = (tile_s // 128) * 128
        if N == 1 and S >= 256 and pl.cdiv(S, tile_s) < 2:
            tile_s = (((S + 1) // 2) + 127) // 128 * 128
    grid = (N, pl.cdiv(S, tile_s))

    # Explicit VMEM budget: double-buffered in/out blocks + weights + slack.
    # Floor at 32 MiB (raises the small default scoped limit on v5e), cap at
    # 48 MiB so a v7x TensorCore (64 MiB physical) keeps headroom.
    blk_in = Cin * tile_s * 2            # bf16
    blk_out = Cout * tile_s * 4          # f32
    vmem_need = 2 * (blk_in + blk_out) + Cout * Cin * 2 + Cout * 4 + (4 << 20)
    vmem_limit = int(min(max(vmem_need, 32 << 20), 48 << 20))

    # Advisory cost estimate reflecting the kernel's real HBM traffic
    # (bf16 input read, tiny weights, f32 output write).
    cost = pl.CostEstimate(
        flops=2 * N * S * Cin * Cout,
        transcendentals=N * S * Cout,
        bytes_accessed=(N * Cin * S * 2) + (Cout * Cin * 2) + (Cout * 4)
                       + (N * Cout * S * 4),
    )

    out_flat = pl.pallas_call(
        _focus_conv_mish_kernel,
        out_shape=jax.ShapeDtypeStruct((N, Cout, S), x.dtype),
        grid_spec=pltpu.PrefetchScalarGridSpec(
            num_scalar_prefetch=0,
            grid=grid,
            in_specs=[
                pl.BlockSpec((None, Cin, tile_s), lambda n, i: (n, 0, i)),
                pl.BlockSpec((Cout, Cin), lambda n, i: (0, 0)),
                pl.BlockSpec((Cout, 1), lambda n, i: (0, 0)),
            ],
            out_specs=pl.BlockSpec((None, Cout, tile_s), lambda n, i: (n, 0, i)),
        ),
        compiler_params=pltpu.CompilerParams(
            dimension_semantics=("parallel", "parallel"),
            vmem_limit_bytes=vmem_limit),
        cost_estimate=cost,
    )(xs2d, w_f, shift_f)

    return out_flat.reshape(N, Cout, H2, W2)


def _reference(x, w, b, gamma, beta, mean, var, eps=1e-5):
    """Pure-JAX f32 reference of the module's math for a correctness check."""
    parts = [x[:, :, 0::2, 0::2], x[:, :, 1::2, 0::2],
             x[:, :, 0::2, 1::2], x[:, :, 1::2, 1::2]]
    xf = jnp.concatenate(parts, axis=1)                      # (N, 4C, H2, W2)
    z = jnp.einsum('nchw,oc->nohw', xf, w) + b[None, :, None, None]
    scale = gamma / jnp.sqrt(var + eps)
    shift = beta - mean * scale
    z = z * scale[None, :, None, None] + shift[None, :, None, None]
    return z * jnp.tanh(jax.nn.softplus(z))                  # Mish


if __name__ == "__main__":
    key = jax.random.PRNGKey(0)
    k_x, k_w, k_b, k_g, k_be, k_m, k_v = jax.random.split(key, 7)

    N, C, H, W = 2, 4, 16, 16        # Focus(c1=4, c2=32, k=1)
    Cin, Cout = 4 * C, 32

    x = jax.random.normal(k_x, (N, C, H, W), dtype=jnp.float32)
    # 1x1 conv weight, PyTorch shape (Cout, Cin, 1, 1) -> stored as (Cout, Cin)
    w = 0.1 * jax.random.normal(k_w, (Cout, Cin), dtype=jnp.float32)
    b = 0.1 * jax.random.normal(k_b, (Cout,), dtype=jnp.float32)
    # BatchNorm2d parameters / running stats (inference mode)
    gamma = 1.0 + 0.1 * jax.random.normal(k_g, (Cout,), dtype=jnp.float32)
    beta = 0.1 * jax.random.normal(k_be, (Cout,), dtype=jnp.float32)
    running_mean = 0.1 * jax.random.normal(k_m, (Cout,), dtype=jnp.float32)
    running_var = jnp.abs(1.0 + 0.1 * jax.random.normal(k_v, (Cout,),
                                                        dtype=jnp.float32))

    focus_jit = jax.jit(focus_forward)
    out = focus_jit(x, w, b, gamma, beta, running_mean, running_var)
    out = jax.block_until_ready(out)

    ref = _reference(x, w, b, gamma, beta, running_mean, running_var)
    assert out.shape == (N, Cout, H // 2, W // 2)
    # Tolerance covers bf16 activations/weights (f32 accumulation), the
    # approx reciprocal in Mish, and MXU rounding.
    max_err = float(jnp.max(jnp.abs(out.astype(jnp.float32) - ref)))
    assert jnp.allclose(out.astype(jnp.float32), ref, atol=2e-2, rtol=2e-2), max_err

    print("KERNEL_OK")
</pallas_src>

<mosaic_0001>
module attributes {stable_mosaic.version = 11 : i64} {
  func.func @_focus_conv_mish_kernel(%arg0: i32, %arg1: i32, %arg2: memref<1x16x64xbf16, #tpu.memory_space<vmem>>, %arg3: memref<32x16xbf16, #tpu.memory_space<vmem>>, %arg4: memref<32x1xf32, #tpu.memory_space<vmem>>, %arg5: memref<1x32x64xf32, #tpu.memory_space<vmem>>) attributes {dimension_semantics = [#tpu.dimension_semantics<parallel>, #tpu.dimension_semantics<parallel>], iteration_bounds = array<i64: 2, 1>, scalar_prefetch = 0 : i64, scratch_operands = 0 : i64, tpu.core_type = #tpu.core_type<tc>, window_params = [{transform_indices = @transform_0, window_bounds = array<i64: 1, 16, 64>}, {pipeline_mode = #tpu.pipeline_mode<synchronous>, transform_indices = @transform_1, window_bounds = array<i64: 32, 16>}, {pipeline_mode = #tpu.pipeline_mode<synchronous>, transform_indices = @transform_2, window_bounds = array<i64: 32, 1>}, {transform_indices = @transform_3, window_bounds = array<i64: 1, 32, 64>}]} {
    %c0 = arith.constant 0 : index
    %c0_0 = arith.constant 0 : index
    %0 = vector.load %arg3[%c0, %c0_0] : memref<32x16xbf16, #tpu.memory_space<vmem>>, vector<32x16xbf16>
    %c0_1 = arith.constant 0 : index
    %c0_2 = arith.constant 0 : index
    %c0_3 = arith.constant 0 : index
    %1 = vector.load %arg2[%c0_1, %c0_2, %c0_3] : memref<1x16x64xbf16, #tpu.memory_space<vmem>>, vector<1x16x64xbf16>
    %2 = vector.shape_cast %1 : vector<1x16x64xbf16> to vector<16x64xbf16>
    %cst = arith.constant dense<0.000000e+00> : vector<32x64xf32>
    %3 = tpu.matmul %0, %2, %cst {dimension_numbers = #tpu.dot_dimension_numbers<[1], [0], [0], [1], [0, 0, 1, 1], [], []>} : vector<32x16xbf16>, vector<16x64xbf16>, vector<32x64xf32> -> vector<32x64xf32>
    %c0_4 = arith.constant 0 : index
    %c0_5 = arith.constant 0 : index
    %4 = vector.load %arg4[%c0_4, %c0_5] : memref<32x1xf32, #tpu.memory_space<vmem>>, vector<32x1xf32>
    %5 = vector.broadcast %4 : vector<32x1xf32> to vector<32x64xf32>
    %6 = arith.addf %3, %5 : vector<32x64xf32>
    %7 = math.exp %6 : vector<32x64xf32>
    %cst_6 = arith.constant 1.000000e+00 : f32
    %8 = vector.broadcast %cst_6 : f32 to vector<32x64xf32>
    %9 = arith.addf %8, %7 : vector<32x64xf32>
    %cst_7 = arith.constant 1.000000e+00 : f32
    %10 = vector.broadcast %cst_7 : f32 to vector<32x64xf32>
    %11 = arith.addf %10, %7 : vector<32x64xf32>
    %12 = arith.mulf %9, %11 : vector<32x64xf32>
    %cst_8 = arith.constant 1.000000e+00 : f32
    %13 = vector.broadcast %cst_8 : f32 to vector<32x64xf32>
    %14 = arith.subf %12, %13 : vector<32x64xf32>
    %15 = arith.mulf %6, %14 : vector<32x64xf32>
    %cst_9 = arith.constant 1.000000e+00 : f32
    %16 = vector.broadcast %cst_9 : f32 to vector<32x64xf32>
    %17 = arith.addf %12, %16 : vector<32x64xf32>
    %18 = tpu.reciprocal %17 {approx = true} : vector<32x64xf32> -> vector<32x64xf32>
    %19 = arith.mulf %15, %18 : vector<32x64xf32>
    %cst_10 = arith.constant 2.000000e+01 : f32
    %20 = vector.broadcast %cst_10 : f32 to vector<32x64xf32>
    %21 = arith.cmpf ogt, %6, %20 : vector<32x64xf32>
    %22 = arith.select %21, %6, %19 : vector<32x64xi1>, vector<32x64xf32>
    %c0_11 = arith.constant 0 : index
    %c0_12 = arith.constant 0 : index
    %c0_13 = arith.constant 0 : index
    %23 = vector.load %arg5[%c0_11, %c0_12, %c0_13] : memref<1x32x64xf32, #tpu.memory_space<vmem>>, vector<1x32x64xf32>
    %24 = vector.shape_cast %23 : vector<1x32x64xf32> to vector<32x64xf32>
    %25 = vector.shape_cast %22 : vector<32x64xf32> to vector<1x32x64xf32>
    tpu.vector_store %arg5[%c0_11, %c0_12, %c0_13], %25 {strides = array<i32>} : memref<1x32x64xf32, #tpu.memory_space<vmem>>, vector<1x32x64xf32>,
    return
  }
  func.func @transform_0(%arg0: i32, %arg1: i32) -> (i32, i32, i32) {
    %c0_i32 = arith.constant 0 : i32
    %c0_i32_0 = arith.constant 0 : i32
    return %arg0, %c0_i32, %arg1 : i32, i32, i32
  }
  func.func @transform_1(%arg0: i32, %arg1: i32) -> (i32, i32) {
    %c0_i32 = arith.constant 0 : i32
    %c0_i32_0 = arith.constant 0 : i32
    %c0_i32_1 = arith.constant 0 : i32
    return %c0_i32, %c0_i32_0 : i32, i32
  }
  func.func @transform_2(%arg0: i32, %arg1: i32) -> (i32, i32) {
    %c0_i32 = arith.constant 0 : i32
    %c0_i32_0 = arith.constant 0 : i32
    %c0_i32_1 = arith.constant 0 : i32
    return %c0_i32, %c0_i32_0 : i32, i32
  }
  func.func @transform_3(%arg0: i32, %arg1: i32) -> (i32, i32, i32) {
    %c0_i32 = arith.constant 0 : i32
    %c0_i32_0 = arith.constant 0 : i32
    return %arg0, %c0_i32, %arg1 : i32, i32, i32
  }
}

</mosaic_0001>

<bundles_post_ra>
// kernel: focus_forward.1
= control target key start
LH: loop header
LB: loop body
LE: loop exit
PB: predicated region body
PF: predicated region fallthrough
CT: control target
= control target key end

     0   :  { %s559_s12 = smov 0   ;;  %s561_s13 = smov 0   ;;  %s620_s0 = inlined_call_operand.vmem [shape: bf16[2,16,64], index: 0, kind: input, shape index: {}]   ;;  %s621_s1 = inlined_call_operand.vmem [shape: bf16[32,16], index: 1, kind: input, shape index: {}]   ;;  %s622_s2 = inlined_call_operand.vmem [shape: f32[32,1], index: 2, kind: input, shape index: {}]   ;;  %s623_s3 = inlined_call_operand.vmem [shape: f32[2,32,64], index: 3, kind: output, shape index: {}]  }
   0x1   :  { %s563_s14 = smov 0  }
   0x2 LB: > { %s25_s15 = sadd.s32 1, %s532_s13  ;;  %p441_p0 = scmp.ge.s32.totalorder %s536_s14, 1  ;;  %s536_s14 = sphi %s563_s14, %s13_s14   ;;  %s532_s13 = sphi %s561_s13, %s625_s13   ;;  %s528_s12 = sphi %s559_s12, %s624_s12  }
   0x3   : > { %p27_p1 = scmp.ge.s32.totalorder %s25_s15, 2  ;;  %p156_p2 = scmp.lt.s32.totalorder %s536_s14, 3 }
   0x5   : > { %s627_s15 = smov (%p27_p1, %s25_s15), 0  ;;  %p157_p3 = pnand %p441_p0, %p156_p2 }
   0x6   : > { %p186_p4 = scmp.lt.s32.totalorder (!%p157_p3), %s528_s12, 1  ;;  %v496_v0 = vld [vmem:[%s621_s1] sm:$0xff] (!%p157_p3)   ;;  %vm249_vm0 = vcmask (!%p157_p3), 130048   ;;  %v211_v1 = vld [vmem:[%s622_s2 + $0x10] sm:$0xff] (!%p157_p3)  ;;  %v538_v3 = vmov (!%p157_p3), 0   ;;  %v212_v4 = vld [vmem:[%s622_s2 + $0x18] sm:$0xff] (!%p157_p3) }
   0x7   : > { %160 = sbr.rel (%p157_p3) target bundleno = 273 (0x111), region = 32  ;;  %464 = vmatprep.mubr.msk.bf16.mxu0 (!%p157_p3), %vm249_vm0, %v496_v0  ;;  %v209_v2 = vld [vmem:[%s622_s2] sm:$0xff] (!%p157_p3)  ;;  %494 = vset.pattern.permute.xlu1 (!%p157_p3), %v538_v3  ;;  %v210_v5 = vld [vmem:[%s622_s2 + $0x8] sm:$0xff] (!%p157_p3)  ;;  %vm349_vm1 = vcmask (!%p157_p3), 523264  }
   0x8   : > { %493 = vset.pattern.permute.xlu0 (!%p157_p3), %v538_v3  ;;  %225 = vperm.xlu1 (!%p157_p3), %494, %v211_v1   ;;  %v497_v7 = vld [vmem:[%s621_s1 + $0x8] sm:$0xff] (!%p157_p3)  }
   0x9   : > { %215 = vperm.xlu0 (!%p157_p3), %493, %v209_v2  }
   0xc   : > { %230 = vperm.xlu1 (!%p157_p3), %494, %v212_v4  }
   0xd   : > { %220 = vperm.xlu0 (!%p157_p3), %493, %v210_v5  }
   0xe   : > { %s629_s12 = smov (!%p186_p4, %s528_s12), 1 }
   0xf   : > { %s457_s22 = sshll.u32 %s629_s12, 3  ;;  %s458_s5 = sshll.u32 %s629_s12, 5 }
  0x10   : > { %s193_s25 = scalar_lea.vmem %s620_s0, %s457_s22  ;;  %s201_s8 = scalar_lea.vmem %s623_s3, %s458_s5 }
  0x11   : > { %v495_v6 = vld [vmem:[%s193_s25] sm:$0xff]  }
  0x12   : > { %462 = vmatprep.subr.bf16.mxu0 %v495_v6 }
  0x13   : > { %463 = vmatpush3.bf16.msra.mxu0 %v495_v6 }
  0x16   : > { %465 = vmatmul.mubr.msk.bf16.vlgmr.msra.gmra.mrb[0].mxu0 %vm249_vm0, %v497_v7 }
  0x87   : > { %v226_v8 = vpop.permute.xlu1 %225 }
  0x88   : > { %v216_v9 = vpop.permute.xlu0 %215 }
  0x8b   : > { %v231_v13 = vpop.permute.xlu1 %230 }
  0x8c   : > { %v221_v16 = vpop.permute.xlu0 %220 }
  0xe9   : > { %v466_v10 = vpop.f32.mrb[0].mxu0 }
  0xea   : > { %v299_v11 = vadd.f32 %v466_v10, %v226_v8  ;;  %v290_v12 = vpop.f32.mrb[1].mxu0 }
  0xeb   : > { %v291_v14 = vadd.f32 %v290_v12, %v216_v9  ;;  %v467_v15 = vpop.f32.mrb[2].mxu0 }
  0xec   : > { %v309_v17 = vmul.f32 1.442695, %v299_v11  ;;  %v302_v18 = vadd.f32 %v467_v15, %v231_v13  ;;  %v293_v19 = vpop.f32.mrb[3].mxu0  ;;  %vm343_vm2 = vcmp.gt.f32.partialorder %v299_v11, 20.0 }
  0xed   : > { %v305_v20 = vmul.f32 1.442695, %v291_v14  ;;  %v294_v21 = vadd.f32 %v293_v19, %v221_v16  ;;  %vm341_vm3 = vcmp.gt.f32.partialorder %v291_v14, 20.0 }
  0xee   : > { %498 = vpow2.f32 %v309_v17  ;;  %v311_v22 = vmul.f32 1.442695, %v302_v18  ;;  %vm344_vm4 = vcmp.gt.f32.partialorder %v302_v18, 20.0 }
  0xef   : > { %500 = vpow2.f32 %v305_v20  ;;  %v307_v23 = vmul.f32 1.442695, %v294_v21  ;;  %vm342_vm5 = vcmp.gt.f32.partialorder %v294_v21, 20.0 }
  0xf0   : > { %502 = vpow2.f32 %v311_v22 }
  0xf1   : > { %504 = vpow2.f32 %v307_v23 }
  0xf8   : > { %v499_v24 = vpop.eup %498 }
  0xf9   : > { %v501_v25 = vpop.eup %500  ;;  %v315_v26 = vadd.f32 1.0, %v499_v24 }
  0xfa   : > { %v503_v27 = vpop.eup %502  ;;  %v313_v28 = vadd.f32 1.0, %v501_v25 }
  0xfb   : > { %v505_v29 = vpop.eup %504  ;;  %v319_v30 = vmul.f32 %v315_v26, %v315_v26  ;;  %v316_v31 = vadd.f32 1.0, %v503_v27 }
  0xfc   : > { %v317_v32 = vmul.f32 %v313_v28, %v313_v28  ;;  %v314_v33 = vadd.f32 1.0, %v505_v29 }
  0xfd   : > { %v331_v34 = vadd.f32 1.0, %v319_v30  ;;  %v320_v35 = vmul.f32 %v316_v31, %v316_v31  ;;  %v453_v40 = vadd.f32 -1.0, %v319_v30 }
  0xfe   : > { %v329_v36 = vadd.f32 1.0, %v317_v32  ;;  %v318_v37 = vmul.f32 %v314_v33, %v314_v33  ;;  %v451_v41 = vadd.f32 -1.0, %v317_v32 }
  0xff   : > { %506 = vrcp.f32 %v331_v34  ;;  %v332_v38 = vadd.f32 1.0, %v320_v35  ;;  %v454_v42 = vadd.f32 -1.0, %v320_v35  ;;  %v327_v44 = vmul.f32 %v453_v40, %v299_v11 }
 0x100   : > { %508 = vrcp.f32 %v329_v36  ;;  %v330_v39 = vadd.f32 1.0, %v318_v37  ;;  %v452_v43 = vadd.f32 -1.0, %v318_v37  ;;  %v325_v46 = vmul.f32 %v451_v41, %v291_v14 }
 0x101   : > { %510 = vrcp.f32 %v332_v38  ;;  %v328_v49 = vmul.f32 %v454_v42, %v302_v18 }
 0x102   : > { %512 = vrcp.f32 %v330_v39  ;;  %v326_v52 = vmul.f32 %v452_v43, %v294_v21 }
 0x109   : > { %v507_v45 = vpop.eup %506 }
 0x10a   : > { %v509_v47 = vpop.eup %508  ;;  %v339_v48 = vmul.f32 %v507_v45, %v327_v44 }
 0x10b   : > { %v511_v50 = vpop.eup %510  ;;  %v337_v51 = vmul.f32 %v509_v47, %v325_v46 }
 0x10c   : > { %v513_v53 = vpop.eup %512  ;;  %v347_v54 = vsel %vm343_vm2, %v299_v11, %v339_v48  ;;  %v340_v55 = vmul.f32 %v511_v50, %v328_v49 }
 0x10d   : > { %352 = vst.msk [vmem:[%s201_s8 + $0x10] sm:$0xff] %vm349_vm1, %v347_v54  ;;  %v345_v56 = vsel %vm341_vm3, %v291_v14, %v337_v51  ;;  %v338_v57 = vmul.f32 %v513_v53, %v326_v52 }
 0x10e   : > { %350 = vst.msk [vmem:[%s201_s8] sm:$0xff] %vm349_vm1, %v345_v56  ;;  %v348_v58 = vsel %vm344_vm4, %v302_v18, %v340_v55 }
 0x10f   : > { %353 = vst.msk [vmem:[%s201_s8 + $0x18] sm:$0xff] %vm349_vm1, %v348_v58  ;;  %v346_v59 = vsel %vm342_vm5, %v294_v21, %v338_v57 }
 0x110   : > { %351 = vst.msk [vmem:[%s201_s8 + $0x8] sm:$0xff] %vm349_vm1, %v346_v59 }
 0x111 PF: > { %s13_s14 = sadd.s32 1, %s536_s14   ;;  %s624_s12 = smov %s532_s13 }
 0x112   : > { %p10_p5 = scmp.ge.s32.totalorder %s13_s14, 4   ;;  %s625_s13 = smov %s627_s15 }
 0x114   :  { %12 = sbr.rel (!%p10_p5) target bundleno = 2 (0x2), region = 62 }

</bundles_post_ra>
